<compile_context>
chip_gen: v5e
topology: v5e:2x2
jax: 0.10.0
libtpu: 0.0.40
codegen_flags: <defaults>
</compile_context>

<pallas_src>
import functools

import jax
import jax.numpy as jnp
from jax.experimental import pallas as pl
from jax.experimental.pallas import tpu as pltpu


def _round_up(x, m):
    return ((x + m - 1) // m) * m


def _pick_tile(dim, cap, align):
    """Largest tile <= cap (multiple of `align`) that minimizes padding of `dim`."""
    aligned = _round_up(dim, align)
    if aligned <= cap:
        return aligned                      # whole dim in one tile
    best_t, best_pad = align, None
    t = (cap // align) * align
    while t >= align:
        pad = _round_up(dim, t) - dim
        if best_pad is None or pad < best_pad:
            best_t, best_pad = t, pad
        t -= align
    return best_t


def _nonlinear_kernel_single_k(x_ref, w_ref, b_ref, o_ref, *, apply_relu):
    # Whole K in VMEM: one MXU matmul, fused bias/activation/store, no scratch.
    out = jnp.dot(x_ref[...], w_ref[...], preferred_element_type=jnp.float32)
    out = out + b_ref[...]                   # (1, tn) broadcasts over rows
    if apply_relu:
        out = jnp.maximum(out, 0.0)
    o_ref[...] = out.astype(o_ref.dtype)


def _nonlinear_kernel_multi_k(x_ref, w_ref, b_ref, o_ref, acc_ref, *, apply_relu):
    k = pl.program_id(2)

    @pl.when(k == 0)
    def _():
        acc_ref[...] = jnp.zeros_like(acc_ref)

    # MXU matmul, f32 accumulation regardless of input dtype.
    acc_ref[...] += jnp.dot(x_ref[...], w_ref[...],
                            preferred_element_type=jnp.float32)

    @pl.when(k == pl.num_programs(2) - 1)
    def _():
        out = acc_ref[...] + b_ref[...]      # (1, tn) broadcasts over rows
        if apply_relu:
            out = jnp.maximum(out, 0.0)
        o_ref[...] = out.astype(o_ref.dtype)  # single fused lane-dense store


def nonlinear_forward(x, w_t, b, *, apply_relu=True, compute_dtype=None,
                      tm_max=256, tn_max=256, tk_max=512):
    """x: (B, Din), w_t: (Din, Dout) (pre-transposed PyTorch weight), b: (Dout,) or (1, Dout)."""
    B, Din = x.shape
    Dout = w_t.shape[1]
    out_dtype = x.dtype

    if compute_dtype is not None:            # e.g. jnp.bfloat16 for native MXU
        x = x.astype(compute_dtype)
        w_t = w_t.astype(compute_dtype)

    # Tile sizes: sublane axis multiple of 8, lane axes multiples of 128.
    tm = _pick_tile(B, tm_max, 8)
    tn = _pick_tile(Dout, tn_max, 128)
    tk = _pick_tile(Din, tk_max, 128)

    Mp = _round_up(B, tm)
    Np = _round_up(Dout, tn)
    Kp = _round_up(Din, tk)

    x_p = x if (Mp == B and Kp == Din) else jnp.pad(x, ((0, Mp - B), (0, Kp - Din)))
    w_p = w_t if (Kp == Din and Np == Dout) else jnp.pad(w_t, ((0, Kp - Din), (0, Np - Dout)))
    b_p = jnp.reshape(b, (1, Dout)).astype(jnp.float32)
    if Np != Dout:
        b_p = jnp.pad(b_p, ((0, 0), (0, Np - Dout)))

    kt = Kp // tk
    elem = jnp.dtype(x_p.dtype).itemsize
    cost = pl.CostEstimate(
        flops=2 * Mp * Np * Kp,
        transcendentals=0,
        bytes_accessed=(Mp * Kp + Kp * Np) * elem
        + Np * 4
        + Mp * Np * jnp.dtype(out_dtype).itemsize,
    )

    if kt == 1:
        # -------- fast path: single K step, no accumulator scratch --------
        out_p = pl.pallas_call(
            functools.partial(_nonlinear_kernel_single_k, apply_relu=apply_relu),
            out_shape=jax.ShapeDtypeStruct((Mp, Np), out_dtype),
            grid_spec=pltpu.PrefetchScalarGridSpec(
                num_scalar_prefetch=0,
                grid=(Mp // tm, Np // tn),
                in_specs=[
                    pl.BlockSpec((tm, Kp), lambda i, j: (i, 0)),   # X tile
                    pl.BlockSpec((Kp, tn), lambda i, j: (0, j)),   # W tile
                    pl.BlockSpec((1, tn), lambda i, j: (0, j)),    # bias tile
                ],
                out_specs=pl.BlockSpec((tm, tn), lambda i, j: (i, j)),
            ),
            compiler_params=pltpu.CompilerParams(
                dimension_semantics=("parallel", "parallel"),
                vmem_limit_bytes=32 * 1024 * 1024,
            ),
            cost_estimate=cost,
        )(x_p, w_p, b_p)
    else:
        # -------- general path: K-tiled accumulation in f32 scratch --------
        out_p = pl.pallas_call(
            functools.partial(_nonlinear_kernel_multi_k, apply_relu=apply_relu),
            out_shape=jax.ShapeDtypeStruct((Mp, Np), out_dtype),
            grid_spec=pltpu.PrefetchScalarGridSpec(
                num_scalar_prefetch=0,
                grid=(Mp // tm, Np // tn, kt),
                in_specs=[
                    pl.BlockSpec((tm, tk), lambda i, j, k: (i, k)),   # X tile
                    pl.BlockSpec((tk, tn), lambda i, j, k: (k, j)),   # W tile
                    pl.BlockSpec((1, tn), lambda i, j, k: (0, j)),    # bias tile
                ],
                out_specs=pl.BlockSpec((tm, tn), lambda i, j, k: (i, j)),
                scratch_shapes=[pltpu.VMEM((tm, tn), jnp.float32)],
            ),
            compiler_params=pltpu.CompilerParams(
                dimension_semantics=("parallel", "parallel", "arbitrary"),
                vmem_limit_bytes=32 * 1024 * 1024,
            ),
            cost_estimate=cost,
        )(x_p, w_p, b_p)

    return out_p[:B, :Dout]


def init_params(key, input_dim, output_dim):
    """Deterministic init matching nn.Linear: U(-1/sqrt(in), 1/sqrt(in))."""
    kw, kb = jax.random.split(key)
    bound = 1.0 / jnp.sqrt(jnp.float32(input_dim))
    # PyTorch weight is (out, in); store its transpose (in, out) for the kernel.
    w = jax.random.uniform(kw, (output_dim, input_dim), jnp.float32, -bound, bound)
    bias = jax.random.uniform(kb, (output_dim,), jnp.float32, -bound, bound)
    return w.T, bias.reshape(1, output_dim)


if __name__ == "__main__":
    key = jax.random.PRNGKey(0)
    kx, kp, kx2, kp2 = jax.random.split(key, 4)

    # --- small demo shape (fast single-K path) -----------------------------
    batch, input_dim, output_dim = 8, 32, 64
    x = jax.random.normal(kx, (batch, input_dim), jnp.float32)
    w_t, b = init_params(kp, input_dim, output_dim)

    out = nonlinear_forward(x, w_t, b)
    jax.block_until_ready(out)

    ref = jnp.maximum(x @ w_t + b, 0.0)
    assert out.shape == (batch, output_dim)
    assert jnp.allclose(out, ref, atol=1e-5, rtol=1e-5)

    # --- second check exercising the K-tiled accumulation / padding path ---
    batch2, input_dim2, output_dim2 = 200, 1280, 200
    x2 = jax.random.normal(kx2, (batch2, input_dim2), jnp.float32)
    w_t2, b2 = init_params(kp2, input_dim2, output_dim2)

    out2 = nonlinear_forward(x2, w_t2, b2, tk_max=512)
    jax.block_until_ready(out2)

    ref2 = jnp.maximum(x2 @ w_t2 + b2, 0.0)
    assert out2.shape == (batch2, output_dim2)
    assert jnp.allclose(out2, ref2, atol=1e-4, rtol=1e-4)

    print("KERNEL_OK")
</pallas_src>

<mosaic_0001>
module attributes {stable_mosaic.version = 11 : i64} {
  func.func @_nonlinear_kernel_single_k(%arg0: i32, %arg1: i32, %arg2: memref<8x128xf32, #tpu.memory_space<vmem>>, %arg3: memref<128x128xf32, #tpu.memory_space<vmem>>, %arg4: memref<1x128xf32, #tpu.memory_space<vmem>>, %arg5: memref<8x128xf32, #tpu.memory_space<vmem>>) attributes {dimension_semantics = [#tpu.dimension_semantics<parallel>, #tpu.dimension_semantics<parallel>], iteration_bounds = array<i64: 1, 1>, scalar_prefetch = 0 : i64, scratch_operands = 0 : i64, tpu.core_type = #tpu.core_type<tc>, window_params = [{transform_indices = @transform_0, window_bounds = array<i64: 8, 128>}, {transform_indices = @transform_1, window_bounds = array<i64: 128, 128>}, {transform_indices = @transform_2, window_bounds = array<i64: 1, 128>}, {transform_indices = @transform_3, window_bounds = array<i64: 8, 128>}]} {
    %c0 = arith.constant 0 : index
    %c0_0 = arith.constant 0 : index
    %0 = vector.load %arg2[%c0, %c0_0] : memref<8x128xf32, #tpu.memory_space<vmem>>, vector<8x128xf32>
    %c0_1 = arith.constant 0 : index
    %c0_2 = arith.constant 0 : index
    %1 = vector.load %arg3[%c0_1, %c0_2] : memref<128x128xf32, #tpu.memory_space<vmem>>, vector<128x128xf32>
    %cst = arith.constant dense<0.000000e+00> : vector<8x128xf32>
    %2 = tpu.matmul %0, %1, %cst {dimension_numbers = #tpu.dot_dimension_numbers<[1], [0], [0], [1], [0, 0, 1, 1], [], []>} : vector<8x128xf32>, vector<128x128xf32>, vector<8x128xf32> -> vector<8x128xf32>
    %c0_3 = arith.constant 0 : index
    %c0_4 = arith.constant 0 : index
    %3 = vector.load %arg4[%c0_3, %c0_4] : memref<1x128xf32, #tpu.memory_space<vmem>>, vector<1x128xf32>
    %4 = vector.broadcast %3 : vector<1x128xf32> to vector<8x128xf32>
    %5 = arith.addf %2, %4 : vector<8x128xf32>
    %cst_5 = arith.constant 0.000000e+00 : f32
    %6 = vector.broadcast %cst_5 : f32 to vector<8x128xf32>
    %7 = arith.maximumf %5, %6 : vector<8x128xf32>
    %c0_6 = arith.constant 0 : index
    %c0_7 = arith.constant 0 : index
    %8 = vector.load %arg5[%c0_6, %c0_7] : memref<8x128xf32, #tpu.memory_space<vmem>>, vector<8x128xf32>
    tpu.vector_store %arg5[%c0_6, %c0_7], %7 {strides = array<i32>} : memref<8x128xf32, #tpu.memory_space<vmem>>, vector<8x128xf32>,
    return
  }
  func.func @transform_0(%arg0: i32, %arg1: i32) -> (i32, i32) {
    %c0_i32 = arith.constant 0 : i32
    %c0_i32_0 = arith.constant 0 : i32
    return %arg0, %c0_i32 : i32, i32
  }
  func.func @transform_1(%arg0: i32, %arg1: i32) -> (i32, i32) {
    %c0_i32 = arith.constant 0 : i32
    %c0_i32_0 = arith.constant 0 : i32
    return %c0_i32, %arg1 : i32, i32
  }
  func.func @transform_2(%arg0: i32, %arg1: i32) -> (i32, i32) {
    %c0_i32 = arith.constant 0 : i32
    %c0_i32_0 = arith.constant 0 : i32
    return %c0_i32, %arg1 : i32, i32
  }
  func.func @transform_3(%arg0: i32, %arg1: i32) -> (i32, i32) {
    %c0_i32 = arith.constant 0 : i32
    return %arg0, %arg1 : i32, i32
  }
}

</mosaic_0001>

<bundles_post_ra>
// kernel: tpu_custom_call.1
= control target key start
LH: loop header
LB: loop body
LE: loop exit
PB: predicated region body
PF: predicated region fallthrough
CT: control target
= control target key end

     0   :  { %8 = vsyncpa [#allocation3], 0  ;;  %s227_s0 = inlined_call_operand.hbm [shape: f32[8,128], index: 0, kind: input, shape index: {}]   ;;  %s228_s1 = inlined_call_operand.hbm [shape: f32[128,128], index: 1, kind: input, shape index: {}]   ;;  %s229_s2 = inlined_call_operand.vmem [shape: f32[1,128], index: 2, kind: input, shape index: {}]   ;;  %s230_s3 = inlined_call_operand.hbm [shape: f32[8,128], index: 3, kind: output, shape index: {}]  }
   0x1   :  { %9 = vsyncpa [#allocation6], 0 }
   0x2   :  { %10 = vsyncpa [#allocation4], 0  ;;  %s16_s14 = sshll.u32 %s227_s0, 4  ;;  %s190_s15 = smov [#allocation2]   ;;  %s17_s14 = int_to_ptr.hbm [resolvable:$true] %s16_s14 }
   0x3   :  { %s18_s16 = sshll.u32 %s190_s15, 4  ;;  %s26_s19 = sshll.u32 %s228_s1, 4  ;;  %s19_s16 = int_to_ptr.vmem [resolvable:$true] %s18_s16  ;;  %s27_s19 = int_to_ptr.hbm [resolvable:$true] %s26_s19 }
   0x4   :  { %21 = dma.hbm_to_vmem [thread:$0]  %s17_s14, 128, %s19_s16, [#allocation3]  }
   0x5   :  { %s191_s20 = smov [#allocation5]   ;;  %s192_s22 = smov 128  }
   0x6   :  { %s28_s21 = sshll.u32 %s191_s20, 4  ;;  %s193_s23 = smov 8   ;;  %s29_s21 = int_to_ptr.vmem [resolvable:$true] %s28_s21 }
   0x7   :  { %34 = dma.hbm_to_vmem [thread:$0]  %s27_s19, 2048, %s29_s21, [#allocation6], %s192_s22, %s192_s22, %s193_s23  }
   0x8   :  { %184 = dma.done.wait [#allocation3], 128  }
   0x9   :  { %185 = vsyncadd [#allocation3], 4294967168 }
   0xa   :  { %186 = dma.done.wait [#allocation6], 2048  }
   0xb   :  { %187 = vsyncadd [#allocation6], 4294965248  ;;  %v61_v0 = vld [vmem:[#allocation5 + $0x78] sm:$0xff]  ;;  %v60_v1 = vld [vmem:[#allocation5 + $0x70] sm:$0xff]  ;;  %s194_s24 = smov [#allocation7]   ;;  %s95_s28 = sshll.u32 %s230_s3, 4  ;;  %s96_s28 = int_to_ptr.hbm [resolvable:$true] %s95_s28 }
   0xc   :  { %66 = vmatpush.msra.mxu0 %v61_v0  ;;  %v59_v2 = vld [vmem:[#allocation5 + $0x68] sm:$0xff]  ;;  %v58_v3 = vld [vmem:[#allocation5 + $0x60] sm:$0xff]  ;;  %v57_v4 = vld [vmem:[#allocation5 + $0x58] sm:$0xff]  ;;  %s93_s25 = sshll.u32 %s194_s24, 4  ;;  %s94_s25 = int_to_ptr.vmem [resolvable:$true] %s93_s25 }
   0xd   :  { %v56_v5 = vld [vmem:[#allocation5 + $0x50] sm:$0xff]  ;;  %v55_v6 = vld [vmem:[#allocation5 + $0x48] sm:$0xff]  ;;  %v54_v7 = vld [vmem:[#allocation5 + $0x40] sm:$0xff] }
   0xe   :  { %67 = vmatpush.msra.mxu0 %v60_v1  ;;  %v53_v8 = vld [vmem:[#allocation5 + $0x38] sm:$0xff]  ;;  %v52_v9 = vld [vmem:[#allocation5 + $0x30] sm:$0xff]  ;;  %v51_v10 = vld [vmem:[#allocation5 + $0x28] sm:$0xff] }
   0xf   :  { %v50_v11 = vld [vmem:[#allocation5 + $0x20] sm:$0xff]  ;;  %v49_v12 = vld [vmem:[#allocation5 + $0x18] sm:$0xff]  ;;  %v48_v13 = vld [vmem:[#allocation5 + $0x10] sm:$0xff] }
  0x10   :  { %68 = vmatpush.msra.mxu0 %v59_v2  ;;  %v47_v14 = vld [vmem:[#allocation5 + $0x8] sm:$0xff]  ;;  %v46_v15 = vld [vmem:[#allocation5] sm:$0xff]  ;;  %v45_v16 = vld [vmem:[#allocation2] sm:$0xff] }
  0x11   :  { %v111_v17 = vld [vmem:[%s229_s2] ss:$0 sm:$0xff] }
  0x12   :  { %69 = vmatpush.msra.mxu0 %v58_v3 }
  0x14   :  { %70 = vmatpush.msra.mxu0 %v57_v4 }
  0x16   :  { %71 = vmatpush.msra.mxu0 %v56_v5 }
  0x18   :  { %72 = vmatpush.msra.mxu0 %v55_v6 }
  0x1a   :  { %73 = vmatpush.msra.mxu0 %v54_v7 }
  0x1c   :  { %74 = vmatpush.msra.mxu0 %v53_v8 }
  0x1e   :  { %75 = vmatpush.msra.mxu0 %v52_v9 }
  0x20   :  { %76 = vmatpush.msra.mxu0 %v51_v10 }
  0x22   :  { %77 = vmatpush.msra.mxu0 %v50_v11 }
  0x24   :  { %78 = vmatpush.msra.mxu0 %v49_v12 }
  0x26   :  { %79 = vmatpush.msra.mxu0 %v48_v13 }
  0x28   :  { %80 = vmatpush.msra.mxu0 %v47_v14 }
  0x2a   :  { %81 = vmatpush.msra.mxu0 %v46_v15 }
  0x2b   :  { %82 = vmatmul.f32.vlgmr.msra.gmra.mxu0 %v45_v16 }
  0xa8   :  { %v83_v18 = vpop.f32.mrf.mxu0 }
  0xa9   :  { %v84_v19 = vadd.f32 %v111_v17, %v83_v18 }
  0xab   :  { %v86_v20 = vmax.f32 %v84_v19, 0.0 }
  0xad   :  { %87 = vst [vmem:[#allocation7] sm:$0xff] %v86_v20 }
  0xae   :  { %98 = dma.vmem_to_hbm [thread:$0]  %s94_s25, 128, %s96_s28, [#allocation4]  }
  0xaf   :  { %188 = dma.done.wait [#allocation4], 128  }
  0xb0   :  { %189 = vsyncadd [#allocation4], 4294967168 }
  0xb1   :  { %103 = vsyncpa [#allocation3], 1 }
  0xb2   :  { %104 = vsyncpa [#allocation6], 1 }
  0xb3   :  { %105 = vsyncpa [#allocation4], 1 }

</bundles_post_ra>
